<compile_context>
chip_gen: v6e
topology: v6e:2x2x1
jax: 0.10.0
libtpu: 0.0.40
codegen_flags: <defaults>
</compile_context>

<pallas_src>
import functools

import jax
import jax.numpy as jnp
import numpy as np
from jax.experimental import pallas as pl
from jax.experimental.pallas import tpu as pltpu

LANE = 128  # TPU lane width; all padded dims are multiples of this.


def _round_up(n, m):
    return ((n + m - 1) // m) * m


def _pick_tile(dim, max_tile):
    """Largest multiple of 128 that divides `dim` and is <= max_tile."""
    t = min(max_tile, dim)
    while dim % t != 0:
        t -= LANE
    return t


def _pick_tiles(m, n, k):
    tn = _pick_tile(n, 512)
    tm = _pick_tile(m, 1024 if tn <= 256 else 512)  # wide rows when N is narrow
    tk = _pick_tile(k, 512)
    return tm, tn, tk


def _matmul_kernel(has_bias, apply_relu, multi_k, *refs):
    """One (TM, TN) tile of  out = [relu]( row_scale * (X @ Y) [+ bias] )."""
    if multi_k:
        refs, acc_ref = refs[:-1], refs[-1]
    if has_bias:
        x_ref, y_ref, scale_ref, b_ref, o_ref = refs
    else:
        x_ref, y_ref, scale_ref, o_ref = refs
        b_ref = None

    def epilogue(acc):
        r = acc * scale_ref[...].astype(jnp.float32)          # D^{-1/2} (f32)
        if b_ref is not None:
            r = r + b_ref[...].astype(jnp.float32)
        if apply_relu:
            r = jnp.maximum(r, 0.0)
        o_ref[...] = r.astype(o_ref.dtype)

    if not multi_k:
        # Single K step: no accumulator scratch, no init/finalize branches.
        epilogue(jnp.dot(x_ref[...], y_ref[...],
                         preferred_element_type=jnp.float32))
    else:
        k = pl.program_id(2)

        @pl.when(k == 0)
        def _():
            acc_ref[...] = jnp.zeros_like(acc_ref)

        acc_ref[...] += jnp.dot(x_ref[...], y_ref[...],
                                preferred_element_type=jnp.float32)

        @pl.when(k == pl.num_programs(2) - 1)
        def _():
            epilogue(acc_ref[...])


def fused_matmul(x, y, row_scale, bias=None, *, relu=False,
                 out_dtype=jnp.float32):
    """Tiled  out = [relu]( row_scale * (x @ y) [+ bias] )  on the MXU.

    x: [M, K], y: [K, N], row_scale: [M, 1], bias: [1, N] or None.
    M, N, K must already be multiples of 128 (the wrapper pads everything).
    """
    m, k = x.shape
    k2, n = y.shape
    assert k == k2 and row_scale.shape == (m, 1)
    assert m % LANE == 0 and n % LANE == 0 and k % LANE == 0

    tm, tn, tk = _pick_tiles(m, n, k)
    nk = k // tk
    multi_k = nk > 1

    in_specs = [
        pl.BlockSpec((tm, tk), lambda i, j, kk: (i, kk)),   # X  /  (A+I)
        pl.BlockSpec((tk, tn), lambda i, j, kk: (kk, j)),   # W  /  scaled XW
        pl.BlockSpec((tm, 1), lambda i, j, kk: (i, 0)),     # per-row D^{-1/2}
    ]
    operands = [x, y, row_scale]
    if bias is not None:
        assert bias.shape == (1, n)
        in_specs.append(pl.BlockSpec((1, tn), lambda i, j, kk: (0, j)))
        operands.append(bias)

    kernel = functools.partial(_matmul_kernel, bias is not None, relu, multi_k)
    return pl.pallas_call(
        kernel,
        out_shape=jax.ShapeDtypeStruct((m, n), out_dtype),
        grid_spec=pltpu.PrefetchScalarGridSpec(
            num_scalar_prefetch=0,
            grid=(m // tm, n // tn, nk),
            in_specs=in_specs,
            out_specs=pl.BlockSpec((tm, tn), lambda i, j, kk: (i, j)),
            scratch_shapes=([pltpu.VMEM((tm, tn), jnp.float32)]
                            if multi_k else []),
        ),
        compiler_params=pltpu.CompilerParams(
            dimension_semantics=("parallel", "parallel", "arbitrary")),
    )(*operands)


def gcn_conv(a_plus_i, dinv, x, w, b, *, relu, out_dtype):
    """One GCNConv with D^{-1/2} folded into the epilogues:
       out = [relu]( dinv * ((A+I) @ (dinv * (x @ w))) + b )."""
    # Projection X @ W, column scaling of A_hat folded into its epilogue.
    xw_s = fused_matmul(x, w, dinv, out_dtype=jnp.bfloat16)
    # Aggregation (A+I) @ XW', row scaling + bias (+ReLU) in the epilogue.
    return fused_matmul(a_plus_i, xw_s, dinv, bias=b, relu=relu,
                        out_dtype=out_dtype)


@jax.jit
def gcn_forward(a_plus_i, dinv, x, w1, b1, w2, b2):
    """Padded GCN forward: GCNConv -> ReLU -> GCNConv (all inputs pre-padded)."""
    # TODO(synk): fuse  h @ W2  into the layer-1 aggregation epilogue (W2 fits
    #             VMEM) to remove one N x hidden HBM round trip.
    h = gcn_conv(a_plus_i, dinv, x, w1, b1, relu=True, out_dtype=jnp.bfloat16)
    return gcn_conv(a_plus_i, dinv, h, w2, b2, relu=False,
                    out_dtype=jnp.float32)


def build_adjacency(edge_index, num_nodes, n_pad):
    """Padded raw (A+I) (exact 0/1, bf16) and padded D^{-1/2} column vector."""
    src, dst = edge_index[0], edge_index[1]
    a = jnp.zeros((num_nodes, num_nodes), jnp.float32)
    a = a.at[dst, src].add(1.0)                      # message j -> i in A[i, j]
    a = a + jnp.eye(num_nodes, dtype=jnp.float32)    # self-loops
    deg = a.sum(axis=1)                              # in-degree incl. self-loop
    dinv = jnp.where(deg > 0, 1.0 / jnp.sqrt(deg), 0.0)
    pad = n_pad - num_nodes
    # Padded rows/cols of (A+I) and padded dinv entries stay exactly zero, so
    # padded rows can never leak into the real (sliced) outputs.
    a_p = jnp.pad(a, ((0, pad), (0, pad))).astype(jnp.bfloat16)
    dinv_p = jnp.pad(dinv, (0, pad)).reshape(-1, 1).astype(jnp.float32)
    return a_p, dinv_p


def _pad2(t, rows, cols):
    return jnp.pad(t, ((0, rows - t.shape[0]), (0, cols - t.shape[1])))


if __name__ == "__main__":
    # Small synthetic bipartite user->book graph (replaces the sqlite glue).
    num_users, num_books = 8, 8
    num_nodes = num_users + num_books                # N = 16
    in_channels = num_nodes                          # identity features
    hidden = 64
    out_channels = 32

    # Deterministic directed edges: user u reads books (u % 8) and ((u+3) % 8).
    edges = []
    for u in range(num_users):
        edges.append((u, num_users + (u % num_books)))
        edges.append((u, num_users + ((u + 3) % num_books)))
    edge_index = jnp.array(edges, dtype=jnp.int32).T  # [2, E]; row0=src, row1=dst

    key = jax.random.PRNGKey(0)
    k1, k2 = jax.random.split(key)

    def glorot(k, shape):
        fan_in, fan_out = shape
        lim = np.sqrt(6.0 / (fan_in + fan_out))
        return jax.random.uniform(k, shape, jnp.float32, -lim, lim)

    x = jnp.eye(num_nodes, dtype=jnp.float32)         # data.x = torch.eye(N)
    w1 = glorot(k1, (in_channels, hidden))
    b1 = jnp.zeros((hidden,), jnp.float32)
    w2 = glorot(k2, (hidden, out_channels))
    b2 = jnp.zeros((out_channels,), jnp.float32)

    # ---- One-time padding / casting, hoisted out of the jitted forward ----
    n_p = _round_up(num_nodes, LANE)
    f_in_p = _round_up(in_channels, LANE)
    hid_p = _round_up(hidden, LANE)
    out_ch_p = _round_up(out_channels, LANE)

    a_plus_i, dinv = build_adjacency(edge_index, num_nodes, n_p)
    x_p = _pad2(x, n_p, f_in_p).astype(jnp.bfloat16)
    w1_p = _pad2(w1, f_in_p, hid_p).astype(jnp.bfloat16)
    b1_p = _pad2(b1.reshape(1, -1), 1, hid_p).astype(jnp.float32)
    w2_p = _pad2(w2, hid_p, out_ch_p).astype(jnp.bfloat16)
    b2_p = _pad2(b2.reshape(1, -1), 1, out_ch_p).astype(jnp.float32)

    out_padded = jax.block_until_ready(
        gcn_forward(a_plus_i, dinv, x_p, w1_p, b1_p, w2_p, b2_p))
    out = np.asarray(out_padded)[:num_nodes, :out_channels]

    # Plain-JAX f32 reference using the true A_hat; the kernel uses bf16
    # operands with f32 accumulation, so tolerances are loosened accordingly.
    a_ref = jnp.zeros((num_nodes, num_nodes), jnp.float32)
    a_ref = a_ref.at[edge_index[1], edge_index[0]].add(1.0)
    a_ref = a_ref + jnp.eye(num_nodes, dtype=jnp.float32)
    d_ref = a_ref.sum(axis=1)
    di_ref = jnp.where(d_ref > 0, 1.0 / jnp.sqrt(d_ref), 0.0)
    a_hat = di_ref[:, None] * a_ref * di_ref[None, :]
    ref_h = jnp.maximum(a_hat @ (x @ w1) + b1[None, :], 0.0)
    ref = a_hat @ (ref_h @ w2) + b2[None, :]
    np.testing.assert_allclose(out, np.asarray(ref), rtol=2e-2, atol=2e-2)

    print("KERNEL_OK")
</pallas_src>

<mosaic_0001>
module attributes {stable_mosaic.version = 11 : i64} {
  func.func @_matmul_kernel(%arg0: i32, %arg1: i32, %arg2: i32, %arg3: memref<128x128xbf16, #tpu.memory_space<vmem>>, %arg4: memref<128x128xbf16, #tpu.memory_space<vmem>>, %arg5: memref<128x1xf32, #tpu.memory_space<vmem>>, %arg6: memref<128x128xbf16, #tpu.memory_space<vmem>>) attributes {dimension_semantics = [#tpu.dimension_semantics<parallel>, #tpu.dimension_semantics<parallel>, #tpu.dimension_semantics<arbitrary>], iteration_bounds = array<i64: 1, 1, 1>, scalar_prefetch = 0 : i64, scratch_operands = 0 : i64, tpu.core_type = #tpu.core_type<tc>, window_params = [{transform_indices = @transform_0, window_bounds = array<i64: 128, 128>}, {transform_indices = @transform_1, window_bounds = array<i64: 128, 128>}, {transform_indices = @transform_2, window_bounds = array<i64: 128, 1>}, {transform_indices = @transform_3, window_bounds = array<i64: 128, 128>}]} {
    %c0 = arith.constant 0 : index
    %c0_0 = arith.constant 0 : index
    %0 = vector.load %arg3[%c0, %c0_0] : memref<128x128xbf16, #tpu.memory_space<vmem>>, vector<128x128xbf16>
    %c0_1 = arith.constant 0 : index
    %c0_2 = arith.constant 0 : index
    %1 = vector.load %arg4[%c0_1, %c0_2] : memref<128x128xbf16, #tpu.memory_space<vmem>>, vector<128x128xbf16>
    %cst = arith.constant dense<0.000000e+00> : vector<128x128xf32>
    %2 = tpu.matmul %0, %1, %cst {dimension_numbers = #tpu.dot_dimension_numbers<[1], [0], [0], [1], [0, 0, 1, 1], [], []>} : vector<128x128xbf16>, vector<128x128xbf16>, vector<128x128xf32> -> vector<128x128xf32>
    %c0_3 = arith.constant 0 : index
    %c0_4 = arith.constant 0 : index
    %3 = vector.load %arg5[%c0_3, %c0_4] : memref<128x1xf32, #tpu.memory_space<vmem>>, vector<128x1xf32>
    %4 = vector.broadcast %3 : vector<128x1xf32> to vector<128x128xf32>
    %5 = arith.mulf %2, %4 : vector<128x128xf32>
    %6 = arith.truncf %5 : vector<128x128xf32> to vector<128x128xbf16>
    %c0_5 = arith.constant 0 : index
    %c0_6 = arith.constant 0 : index
    %7 = vector.load %arg6[%c0_5, %c0_6] : memref<128x128xbf16, #tpu.memory_space<vmem>>, vector<128x128xbf16>
    tpu.vector_store %arg6[%c0_5, %c0_6], %6 {strides = array<i32>} : memref<128x128xbf16, #tpu.memory_space<vmem>>, vector<128x128xbf16>,
    return
  }
  func.func @transform_0(%arg0: i32, %arg1: i32, %arg2: i32) -> (i32, i32) {
    %c0_i32 = arith.constant 0 : i32
    return %arg0, %arg2 : i32, i32
  }
  func.func @transform_1(%arg0: i32, %arg1: i32, %arg2: i32) -> (i32, i32) {
    %c0_i32 = arith.constant 0 : i32
    return %arg2, %arg1 : i32, i32
  }
  func.func @transform_2(%arg0: i32, %arg1: i32, %arg2: i32) -> (i32, i32) {
    %c0_i32 = arith.constant 0 : i32
    %c0_i32_0 = arith.constant 0 : i32
    return %arg0, %c0_i32 : i32, i32
  }
  func.func @transform_3(%arg0: i32, %arg1: i32, %arg2: i32) -> (i32, i32) {
    %c0_i32 = arith.constant 0 : i32
    return %arg0, %arg1 : i32, i32
  }
}

module attributes {stable_mosaic.version = 11 : i64} {
  func.func @_matmul_kernel(%arg0: i32, %arg1: i32, %arg2: i32, %arg3: memref<128x128xbf16, #tpu.memory_space<vmem>>, %arg4: memref<128x128xbf16, #tpu.memory_space<vmem>>, %arg5: memref<128x1xf32, #tpu.memory_space<vmem>>, %arg6: memref<1x128xf32, #tpu.memory_space<vmem>>, %arg7: memref<128x128xf32, #tpu.memory_space<vmem>>) attributes {dimension_semantics = [#tpu.dimension_semantics<parallel>, #tpu.dimension_semantics<parallel>, #tpu.dimension_semantics<arbitrary>], iteration_bounds = array<i64: 1, 1, 1>, scalar_prefetch = 0 : i64, scratch_operands = 0 : i64, tpu.core_type = #tpu.core_type<tc>, window_params = [{transform_indices = @transform_0, window_bounds = array<i64: 128, 128>}, {transform_indices = @transform_1, window_bounds = array<i64: 128, 128>}, {transform_indices = @transform_2, window_bounds = array<i64: 128, 1>}, {transform_indices = @transform_3, window_bounds = array<i64: 1, 128>}, {transform_indices = @transform_4, window_bounds = array<i64: 128, 128>}]} {
    %c0 = arith.constant 0 : index
    %c0_0 = arith.constant 0 : index
    %0 = vector.load %arg3[%c0, %c0_0] : memref<128x128xbf16, #tpu.memory_space<vmem>>, vector<128x128xbf16>
    %c0_1 = arith.constant 0 : index
    %c0_2 = arith.constant 0 : index
    %1 = vector.load %arg4[%c0_1, %c0_2] : memref<128x128xbf16, #tpu.memory_space<vmem>>, vector<128x128xbf16>
    %cst = arith.constant dense<0.000000e+00> : vector<128x128xf32>
    %2 = tpu.matmul %0, %1, %cst {dimension_numbers = #tpu.dot_dimension_numbers<[1], [0], [0], [1], [0, 0, 1, 1], [], []>} : vector<128x128xbf16>, vector<128x128xbf16>, vector<128x128xf32> -> vector<128x128xf32>
    %c0_3 = arith.constant 0 : index
    %c0_4 = arith.constant 0 : index
    %3 = vector.load %arg5[%c0_3, %c0_4] : memref<128x1xf32, #tpu.memory_space<vmem>>, vector<128x1xf32>
    %4 = vector.broadcast %3 : vector<128x1xf32> to vector<128x128xf32>
    %5 = arith.mulf %2, %4 : vector<128x128xf32>
    %c0_5 = arith.constant 0 : index
    %c0_6 = arith.constant 0 : index
    %6 = vector.load %arg6[%c0_5, %c0_6] : memref<1x128xf32, #tpu.memory_space<vmem>>, vector<1x128xf32>
    %7 = vector.broadcast %6 : vector<1x128xf32> to vector<128x128xf32>
    %8 = arith.addf %5, %7 : vector<128x128xf32>
    %c0_7 = arith.constant 0 : index
    %c0_8 = arith.constant 0 : index
    %9 = vector.load %arg7[%c0_7, %c0_8] : memref<128x128xf32, #tpu.memory_space<vmem>>, vector<128x128xf32>
    tpu.vector_store %arg7[%c0_7, %c0_8], %8 {strides = array<i32>} : memref<128x128xf32, #tpu.memory_space<vmem>>, vector<128x128xf32>,
    return
  }
  func.func @transform_0(%arg0: i32, %arg1: i32, %arg2: i32) -> (i32, i32) {
    %c0_i32 = arith.constant 0 : i32
    return %arg0, %arg2 : i32, i32
  }
  func.func @transform_1(%arg0: i32, %arg1: i32, %arg2: i32) -> (i32, i32) {
    %c0_i32 = arith.constant 0 : i32
    return %arg2, %arg1 : i32, i32
  }
  func.func @transform_2(%arg0: i32, %arg1: i32, %arg2: i32) -> (i32, i32) {
    %c0_i32 = arith.constant 0 : i32
    %c0_i32_0 = arith.constant 0 : i32
    return %arg0, %c0_i32 : i32, i32
  }
  func.func @transform_3(%arg0: i32, %arg1: i32, %arg2: i32) -> (i32, i32) {
    %c0_i32 = arith.constant 0 : i32
    %c0_i32_0 = arith.constant 0 : i32
    return %c0_i32, %arg1 : i32, i32
  }
  func.func @transform_4(%arg0: i32, %arg1: i32, %arg2: i32) -> (i32, i32) {
    %c0_i32 = arith.constant 0 : i32
    return %arg0, %arg1 : i32, i32
  }
}

module attributes {stable_mosaic.version = 11 : i64} {
  func.func @_matmul_kernel(%arg0: i32, %arg1: i32, %arg2: i32, %arg3: memref<128x128xbf16, #tpu.memory_space<vmem>>, %arg4: memref<128x128xbf16, #tpu.memory_space<vmem>>, %arg5: memref<128x1xf32, #tpu.memory_space<vmem>>, %arg6: memref<1x128xf32, #tpu.memory_space<vmem>>, %arg7: memref<128x128xbf16, #tpu.memory_space<vmem>>) attributes {dimension_semantics = [#tpu.dimension_semantics<parallel>, #tpu.dimension_semantics<parallel>, #tpu.dimension_semantics<arbitrary>], iteration_bounds = array<i64: 1, 1, 1>, scalar_prefetch = 0 : i64, scratch_operands = 0 : i64, tpu.core_type = #tpu.core_type<tc>, window_params = [{transform_indices = @transform_0, window_bounds = array<i64: 128, 128>}, {transform_indices = @transform_1, window_bounds = array<i64: 128, 128>}, {transform_indices = @transform_2, window_bounds = array<i64: 128, 1>}, {transform_indices = @transform_3, window_bounds = array<i64: 1, 128>}, {transform_indices = @transform_4, window_bounds = array<i64: 128, 128>}]} {
    %c0 = arith.constant 0 : index
    %c0_0 = arith.constant 0 : index
    %0 = vector.load %arg3[%c0, %c0_0] : memref<128x128xbf16, #tpu.memory_space<vmem>>, vector<128x128xbf16>
    %c0_1 = arith.constant 0 : index
    %c0_2 = arith.constant 0 : index
    %1 = vector.load %arg4[%c0_1, %c0_2] : memref<128x128xbf16, #tpu.memory_space<vmem>>, vector<128x128xbf16>
    %cst = arith.constant dense<0.000000e+00> : vector<128x128xf32>
    %2 = tpu.matmul %0, %1, %cst {dimension_numbers = #tpu.dot_dimension_numbers<[1], [0], [0], [1], [0, 0, 1, 1], [], []>} : vector<128x128xbf16>, vector<128x128xbf16>, vector<128x128xf32> -> vector<128x128xf32>
    %c0_3 = arith.constant 0 : index
    %c0_4 = arith.constant 0 : index
    %3 = vector.load %arg5[%c0_3, %c0_4] : memref<128x1xf32, #tpu.memory_space<vmem>>, vector<128x1xf32>
    %4 = vector.broadcast %3 : vector<128x1xf32> to vector<128x128xf32>
    %5 = arith.mulf %2, %4 : vector<128x128xf32>
    %c0_5 = arith.constant 0 : index
    %c0_6 = arith.constant 0 : index
    %6 = vector.load %arg6[%c0_5, %c0_6] : memref<1x128xf32, #tpu.memory_space<vmem>>, vector<1x128xf32>
    %7 = vector.broadcast %6 : vector<1x128xf32> to vector<128x128xf32>
    %8 = arith.addf %5, %7 : vector<128x128xf32>
    %cst_7 = arith.constant 0.000000e+00 : f32
    %9 = vector.broadcast %cst_7 : f32 to vector<128x128xf32>
    %10 = arith.maximumf %8, %9 : vector<128x128xf32>
    %11 = arith.truncf %10 : vector<128x128xf32> to vector<128x128xbf16>
    %c0_8 = arith.constant 0 : index
    %c0_9 = arith.constant 0 : index
    %12 = vector.load %arg7[%c0_8, %c0_9] : memref<128x128xbf16, #tpu.memory_space<vmem>>, vector<128x128xbf16>
    tpu.vector_store %arg7[%c0_8, %c0_9], %11 {strides = array<i32>} : memref<128x128xbf16, #tpu.memory_space<vmem>>, vector<128x128xbf16>,
    return
  }
  func.func @transform_0(%arg0: i32, %arg1: i32, %arg2: i32) -> (i32, i32) {
    %c0_i32 = arith.constant 0 : i32
    return %arg0, %arg2 : i32, i32
  }
  func.func @transform_1(%arg0: i32, %arg1: i32, %arg2: i32) -> (i32, i32) {
    %c0_i32 = arith.constant 0 : i32
    return %arg2, %arg1 : i32, i32
  }
  func.func @transform_2(%arg0: i32, %arg1: i32, %arg2: i32) -> (i32, i32) {
    %c0_i32 = arith.constant 0 : i32
    %c0_i32_0 = arith.constant 0 : i32
    return %arg0, %c0_i32 : i32, i32
  }
  func.func @transform_3(%arg0: i32, %arg1: i32, %arg2: i32) -> (i32, i32) {
    %c0_i32 = arith.constant 0 : i32
    %c0_i32_0 = arith.constant 0 : i32
    return %c0_i32, %arg1 : i32, i32
  }
  func.func @transform_4(%arg0: i32, %arg1: i32, %arg2: i32) -> (i32, i32) {
    %c0_i32 = arith.constant 0 : i32
    return %arg0, %arg1 : i32, i32
  }
}

</mosaic_0001>

<bundles_post_ra>
// kernel: gcn_forward.5
= control target key start
LH: loop header
LB: loop body
LE: loop exit
PB: predicated region body
PF: predicated region fallthrough
CT: control target
= control target key end

     0   :  { %v657_v1 = vmov 0   ;;  %s827_s1 = inlined_call_operand.vmem [shape: bf16[128,128], index: 1, kind: input, shape index: {}]   ;;  %s828_s0 = inlined_call_operand.vmem [shape: bf16[128,128], index: 0, kind: input, shape index: {}]   ;;  %s829_s2 = inlined_call_operand.vmem [shape: f32[128,1], index: 2, kind: input, shape index: {}]   ;;  %s830_s3 = inlined_call_operand.vmem [shape: f32[1,128], index: 3, kind: input, shape index: {}]   ;;  %s831_s4 = inlined_call_operand.vmem [shape: bf16[128,128], index: 4, kind: output, shape index: {}]  }
   0x1   :  { %v641_v0 = vld [vmem:[%s827_s1 + $0x38] sm:$0xff]   ;;  %640 = vset.pattern.permute.xlu1 %v657_v1  ;;  %639 = vset.pattern.permute.xlu0 %v657_v1  ;;  %v642_v2 = vld [vmem:[%s827_s1 + $0x30] sm:$0xff]   ;;  %v643_v3 = vld [vmem:[%s827_s1 + $0x28] sm:$0xff]  }
   0x2   :  { %590 = vmatprep.subr.bf16.mxu0 %v641_v0  ;;  %622 = vmatprep.subr.bf16.mxu1 %v641_v0  ;;  %v644_v4 = vld [vmem:[%s827_s1 + $0x20] sm:$0xff]   ;;  %v645_v7 = vld [vmem:[%s827_s1 + $0x18] sm:$0xff]   ;;  %v646_v8 = vld [vmem:[%s827_s1 + $0x10] sm:$0xff]  }
   0x3   :  { %591 = vmatpush3.bf16.msra.mxu0 %v641_v0  ;;  %630 = vmatpush3.bf16.msra.mxu1 %v641_v0  ;;  %v649_v5 = vld [vmem:[%s828_s0] sm:$0xff]   ;;  %v245_v9 = vld [vmem:[%s829_s2 + $0x10] sm:$0xff]  ;;  %v246_v11 = vld [vmem:[%s829_s2 + $0x18] sm:$0xff] }
   0x4   :  { %592 = vmatprep.subr.bf16.mxu0 %v642_v2  ;;  %623 = vmatprep.subr.bf16.mxu1 %v642_v2  ;;  %v650_v6 = vld [vmem:[%s828_s0 + $0x20] sm:$0xff]   ;;  %v244_v12 = vld [vmem:[%s829_s2 + $0x8] sm:$0xff]  ;;  %v250_v17 = vld [vmem:[%s829_s2 + $0x38] sm:$0xff] }
   0x5   :  { %606 = vmatprep.mubr.bf16.mxu0 %v649_v5  ;;  %614 = vmatprep.mubr.bf16.mxu1 %v650_v6  ;;  %v243_v10 = vld [vmem:[%s829_s2] sm:$0xff]  ;;  %v647_v13 = vld [vmem:[%s827_s1 + $0x8] sm:$0xff]   ;;  %v249_v18 = vld [vmem:[%s829_s2 + $0x30] sm:$0xff] }
   0x6   :  { %271 = vperm.xlu1 %640, %v245_v9   ;;  %261 = vperm.xlu0 %639, %v243_v10   ;;  %v248_v14 = vld [vmem:[%s829_s2 + $0x28] sm:$0xff]  ;;  %v247_v15 = vld [vmem:[%s829_s2 + $0x20] sm:$0xff]  ;;  %v653_v23 = vld [vmem:[%s828_s0 + $0x10] sm:$0xff]  }
   0x7   :  { %593 = vmatpush3.bf16.msra.mxu0 %v642_v2  ;;  %631 = vmatpush3.bf16.msra.mxu1 %v642_v2  ;;  %v648_v16 = vld [vmem:[%s827_s1] sm:$0xff]   ;;  %v651_v19 = vld [vmem:[%s828_s0 + $0x8] sm:$0xff]   ;;  %v654_v24 = vld [vmem:[%s828_s0 + $0x30] sm:$0xff]  }
   0x8   :  { %594 = vmatprep.subr.bf16.mxu0 %v643_v3  ;;  %624 = vmatprep.subr.bf16.mxu1 %v643_v3  ;;  %v652_v20 = vld [vmem:[%s828_s0 + $0x28] sm:$0xff]   ;;  %v251_v22 = vld [vmem:[%s829_s2 + $0x40] sm:$0xff]  ;;  %v254_v25 = vld [vmem:[%s829_s2 + $0x58] sm:$0xff] }
   0x9   :  { %v252_v21 = vld [vmem:[%s829_s2 + $0x48] sm:$0xff]  ;;  %v253_v26 = vld [vmem:[%s829_s2 + $0x50] sm:$0xff]  ;;  %v655_v27 = vld [vmem:[%s828_s0 + $0x18] sm:$0xff]  }
   0xa   :  { %276 = vperm.xlu1 %640, %v246_v11   ;;  %266 = vperm.xlu0 %639, %v244_v12   ;;  %v656_v28 = vld [vmem:[%s828_s0 + $0x38] sm:$0xff]   ;;  %v256_v29 = vld [vmem:[%s829_s2 + $0x68] sm:$0xff]  ;;  %v255_v30 = vld [vmem:[%s829_s2 + $0x60] sm:$0xff] }
   0xb   :  { %595 = vmatpush3.bf16.msra.mxu0 %v643_v3  ;;  %632 = vmatpush3.bf16.msra.mxu1 %v643_v3  ;;  %v258_v31 = vld [vmem:[%s829_s2 + $0x78] sm:$0xff]  ;;  %v257_v32 = vld [vmem:[%s829_s2 + $0x70] sm:$0xff]  ;;  %v784_v49 = vld [vmem:[%s830_s3] ss:$0 sm:$0xff] }
   0xc   :  { %596 = vmatprep.subr.bf16.mxu0 %v644_v4  ;;  %625 = vmatprep.subr.bf16.mxu1 %v644_v4 }
   0xe   :  { %286 = vperm.xlu1 %640, %v248_v14   ;;  %281 = vperm.xlu0 %639, %v247_v15  }
   0xf   :  { %597 = vmatpush3.bf16.msra.mxu0 %v644_v4  ;;  %633 = vmatpush3.bf16.msra.mxu1 %v644_v4 }
  0x10   :  { %598 = vmatprep.subr.bf16.mxu0 %v645_v7  ;;  %626 = vmatprep.subr.bf16.mxu1 %v645_v7 }
  0x12   :  { %296 = vperm.xlu1 %640, %v250_v17   ;;  %291 = vperm.xlu0 %639, %v249_v18  }
  0x13   :  { %599 = vmatpush3.bf16.msra.mxu0 %v645_v7  ;;  %634 = vmatpush3.bf16.msra.mxu1 %v645_v7 }
  0x14   :  { %600 = vmatprep.subr.bf16.mxu0 %v646_v8  ;;  %627 = vmatprep.subr.bf16.mxu1 %v646_v8 }
  0x16   :  { %306 = vperm.xlu1 %640, %v252_v21   ;;  %301 = vperm.xlu0 %639, %v251_v22  }
  0x17   :  { %601 = vmatpush3.bf16.msra.mxu0 %v646_v8  ;;  %635 = vmatpush3.bf16.msra.mxu1 %v646_v8 }
  0x18   :  { %602 = vmatprep.subr.bf16.mxu0 %v647_v13  ;;  %628 = vmatprep.subr.bf16.mxu1 %v647_v13 }
  0x1a   :  { %316 = vperm.xlu1 %640, %v254_v25   ;;  %311 = vperm.xlu0 %639, %v253_v26  }
  0x1b   :  { %603 = vmatpush3.bf16.msra.mxu0 %v647_v13  ;;  %636 = vmatpush3.bf16.msra.mxu1 %v647_v13 }
  0x1c   :  { %604 = vmatprep.subr.bf16.mxu0 %v648_v16  ;;  %629 = vmatprep.subr.bf16.mxu1 %v648_v16 }
  0x1e   :  { %326 = vperm.xlu1 %640, %v256_v29   ;;  %321 = vperm.xlu0 %639, %v255_v30  }
  0x1f   :  { %605 = vmatpush3.bf16.msra.mxu0 %v648_v16  ;;  %637 = vmatpush3.bf16.msra.mxu1 %v648_v16 }
  0x22   :  { %607 = vmatmul.mubr.bf16.vlgmr.msra.gmra.mxu0 %v651_v19  ;;  %615 = vmatmul.mubr.bf16.vlgmr.msra.gmra.mxu1 %v652_v20 }
  0x23   :  { %610 = vmatprep.mubr.bf16.mxu0 %v653_v23  ;;  %618 = vmatprep.mubr.bf16.mxu1 %v654_v24 }
  0x24   :  { %336 = vperm.xlu1 %640, %v258_v31   ;;  %331 = vperm.xlu0 %639, %v257_v32  }
  0x2a   :  { %611 = vmatmul.mubr.bf16.gmra.mxu0 %v655_v27  ;;  %619 = vmatmul.mubr.bf16.gmra.mxu1 %v656_v28 }
  0x81   :  { %v262_v33 = vpop.permute.xlu0 %261  ;;  %v272_v34 = vpop.permute.xlu1 %271 }
  0x85   :  { %v267_v35 = vpop.permute.xlu0 %266  ;;  %v277_v36 = vpop.permute.xlu1 %276 }
  0x89   :  { %v282_v37 = vpop.permute.xlu0 %281  ;;  %v779_v38 = vpop.permute.xlu1 %286 }
  0x8d   :  { %v292_v39 = vpop.permute.xlu0 %291  ;;  %v297_v40 = vpop.permute.xlu1 %296 }
  0x91   :  { %v302_v41 = vpop.permute.xlu0 %301  ;;  %v307_v42 = vpop.permute.xlu1 %306 }
  0x95   :  { %v312_v43 = vpop.permute.xlu0 %311  ;;  %v317_v46 = vpop.permute.xlu1 %316 }
  0x99   :  { %v322_v52 = vpop.permute.xlu0 %321  ;;  %v327_v63 = vpop.permute.xlu1 %326 }
  0x9f   :  { %v332_v8 = vpop.permute.xlu0 %331  ;;  %v337_v29 = vpop.permute.xlu1 %336 }
  0xe2   :  { %v608_v44 = vpop.f32.mrf.mxu0  ;;  %v616_v45 = vpop.f32.mrf.mxu1 }
  0xe3   :  { %v341_v47 = vmul.f32 %v608_v44, %v272_v34  ;;  %v349_v48 = vmul.f32 %v616_v45, %v312_v43 }
  0xe4   :  { %v180_v50 = vpop.f32.mrf.mxu0  ;;  %v212_v51 = vpop.f32.mrf.mxu1 }
  0xe5   :  { %v339_v53 = vmul.f32 %v262_v33, %v180_v50  ;;  %v347_v54 = vmul.f32 %v302_v41, %v212_v51  ;;  %v364_v57 = vadd.f32 %v784_v49, %v341_v47  ;;  %v372_v58 = vadd.f32 %v784_v49, %v349_v48 }
  0xe6   :  { %v609_v55 = vpop.f32.mrf.mxu0  ;;  %v617_v56 = vpop.f32.mrf.mxu1 }
  0xe7   :  { %v342_v59 = vmul.f32 %v609_v55, %v277_v36  ;;  %v350_v60 = vmul.f32 %v617_v56, %v317_v46  ;;  %v362_v0 = vadd.f32 %v784_v49, %v339_v53  ;;  %v370_v1 = vadd.f32 %v784_v49, %v347_v54 }
  0xe8   :  { %v183_v61 = vpop.f32.mrf.mxu0  ;;  %v215_v62 = vpop.f32.mrf.mxu1  ;;  %v380_v9 = vmax.f32 %v364_v57, 0.0  ;;  %v388_v10 = vmax.f32 %v372_v58, 0.0 }
  0xe9   :  { %v340_v2 = vmul.f32 %v267_v35, %v183_v61  ;;  %v348_v3 = vmul.f32 %v307_v42, %v215_v62  ;;  %v365_v4 = vadd.f32 %v784_v49, %v342_v59  ;;  %v373_v5 = vadd.f32 %v784_v49, %v350_v60 }
  0xea   :  { %v612_v6 = vpop.f32.mrf.mxu0  ;;  %v620_v7 = vpop.f32.mrf.mxu1  ;;  %v378_v19 = vmax.f32 %v362_v0, 0.0  ;;  %v386_v20 = vmax.f32 %v370_v1, 0.0 }
  0xeb   :  { %v363_v11 = vadd.f32 %v784_v49, %v340_v2  ;;  %v371_v12 = vadd.f32 %v784_v49, %v348_v3  ;;  %v381_v13 = vmax.f32 %v365_v4, 0.0  ;;  %v389_v14 = vmax.f32 %v373_v5, 0.0 }
  0xec   :  { %v345_v15 = vmul.f32 %v612_v6, %v292_v39  ;;  %v353_v16 = vmul.f32 %v620_v7, %v332_v8  ;;  %v196_v17 = vpop.f32.mrf.mxu0  ;;  %v228_v18 = vpop.f32.mrf.mxu1 }
  0xed   :  { %v379_v21 = vmax.f32 %v363_v11, 0.0  ;;  %v387_v22 = vmax.f32 %v371_v12, 0.0  ;;  %v535_v23 = vpack.c.bf16 %v381_v13, %v380_v9  ;;  %v555_v24 = vpack.c.bf16 %v389_v14, %v388_v10 }
  0xee   :  { %v343_v25 = vmul.f32 %v282_v37, %v196_v17  ;;  %v351_v26 = vmul.f32 %v322_v52, %v228_v18  ;;  %v613_v27 = vpop.f32.mrf.mxu0  ;;  %v621_v28 = vpop.f32.mrf.mxu1  ;;  %v368_v32 = vadd.f32 %v784_v49, %v345_v15  ;;  %v376_v33 = vadd.f32 %v784_v49, %v353_v16 }
  0xef   :  { %v530_v30 = vpack.c.bf16 %v379_v21, %v378_v19  ;;  %v550_v31 = vpack.c.bf16 %v387_v22, %v386_v20  ;;  %567 = vst [vmem:[%s831_s4 + $0x8] sm:$0xff] %v535_v23   ;;  %571 = vst [vmem:[%s831_s4 + $0x28] sm:$0xff] %v555_v24   ;;  %v346_v34 = vmul.f32 %v613_v27, %v297_v40 }
  0xf0   :  { %v354_v35 = vmul.f32 %v621_v28, %v337_v29  ;;  %v199_v36 = vpop.f32.mrf.mxu0  ;;  %v231_v37 = vpop.f32.mrf.mxu1  ;;  %v366_v39 = vadd.f32 %v784_v49, %v343_v25  ;;  %v374_v41 = vadd.f32 %v784_v49, %v351_v26  ;;  %v384_v47 = vmax.f32 %v368_v32, 0.0 }
  0xf1   :  { %531 = vst [vmem:[%s831_s4] sm:$0xff] %v530_v30   ;;  %570 = vst [vmem:[%s831_s4 + $0x20] sm:$0xff] %v550_v31   ;;  %v344_v42 = vmul.f32 %v779_v38, %v199_v36  ;;  %v352_v43 = vmul.f32 %v327_v63, %v231_v37  ;;  %v369_v40 = vadd.f32 %v784_v49, %v346_v34  ;;  %v392_v48 = vmax.f32 %v376_v33, 0.0 }
  0xf2   :  { %v377_v44 = vadd.f32 %v784_v49, %v354_v35  ;;  %v382_v52 = vmax.f32 %v366_v39, 0.0  ;;  %v390_v53 = vmax.f32 %v374_v41, 0.0 }
  0xf3   :  { %v367_v45 = vadd.f32 %v784_v49, %v344_v42  ;;  %v375_v46 = vadd.f32 %v784_v49, %v352_v43  ;;  %v385_v50 = vmax.f32 %v369_v40, 0.0 }
  0xf4   :  { %v393_v51 = vmax.f32 %v377_v44, 0.0 }
  0xf5   :  { %v383_v54 = vmax.f32 %v367_v45, 0.0  ;;  %v391_v55 = vmax.f32 %v375_v46, 0.0  ;;  %v545_v56 = vpack.c.bf16 %v385_v50, %v384_v47 }
  0xf6   :  { %v565_v57 = vpack.c.bf16 %v393_v51, %v392_v48 }
  0xf7   :  { %v540_v38 = vpack.c.bf16 %v383_v54, %v382_v52  ;;  %v560_v58 = vpack.c.bf16 %v391_v55, %v390_v53  ;;  %569 = vst [vmem:[%s831_s4 + $0x18] sm:$0xff] %v545_v56  }
  0xf8   :  { %573 = vst [vmem:[%s831_s4 + $0x38] sm:$0xff] %v565_v57  }
  0xf9   :  { %568 = vst [vmem:[%s831_s4 + $0x10] sm:$0xff] %v540_v38   ;;  %572 = vst [vmem:[%s831_s4 + $0x30] sm:$0xff] %v560_v58  }

// kernel: gcn_forward.7
= control target key start
LH: loop header
LB: loop body
LE: loop exit
PB: predicated region body
PF: predicated region fallthrough
CT: control target
= control target key end

     0   :  { %v536_v2 = vmov 0   ;;  %s688_s0 = inlined_call_operand.vmem [shape: bf16[128,128], index: 0, kind: input, shape index: {}]   ;;  %s689_s1 = inlined_call_operand.vmem [shape: bf16[128,128], index: 1, kind: input, shape index: {}]   ;;  %s690_s2 = inlined_call_operand.vmem [shape: f32[128,1], index: 2, kind: input, shape index: {}]   ;;  %s691_s3 = inlined_call_operand.vmem [shape: f32[1,128], index: 3, kind: input, shape index: {}]   ;;  %s692_s4 = inlined_call_operand.hbm [shape: f32[128,128], index: 4, kind: output, shape index: {}]  }
   0x1   :  { %v498_v0 = vld [vmem:[%s689_s1 + $0x38] sm:$0xff]   ;;  %v499_v1 = vld [vmem:[%s689_s1 + $0x30] sm:$0xff]   ;;  %497 = vset.pattern.permute.xlu1 %v536_v2  ;;  %496 = vset.pattern.permute.xlu0 %v536_v2  ;;  %v500_v3 = vld [vmem:[%s689_s1 + $0x28] sm:$0xff]  }
   0x2   :  { %444 = vmatprep.subr.bf16.mxu0 %v498_v0  ;;  %476 = vmatprep.subr.bf16.mxu1 %v498_v0  ;;  %v501_v4 = vld [vmem:[%s689_s1 + $0x20] sm:$0xff]   ;;  %v502_v7 = vld [vmem:[%s689_s1 + $0x18] sm:$0xff]   ;;  %v503_v8 = vld [vmem:[%s689_s1 + $0x10] sm:$0xff]  }
   0x3   :  { %445 = vmatpush3.bf16.msra.mxu0 %v498_v0  ;;  %484 = vmatpush3.bf16.msra.mxu1 %v498_v0  ;;  %v506_v5 = vld [vmem:[%s688_s0] sm:$0xff]   ;;  %v246_v9 = vld [vmem:[%s690_s2 + $0x10] sm:$0xff]  ;;  %v247_v11 = vld [vmem:[%s690_s2 + $0x18] sm:$0xff] }
   0x4   :  { %446 = vmatprep.subr.bf16.mxu0 %v499_v1  ;;  %477 = vmatprep.subr.bf16.mxu1 %v499_v1  ;;  %v507_v6 = vld [vmem:[%s688_s0 + $0x20] sm:$0xff]   ;;  %v245_v12 = vld [vmem:[%s690_s2 + $0x8] sm:$0xff] }
   0x5   :  { %460 = vmatprep.mubr.bf16.mxu0 %v506_v5  ;;  %468 = vmatprep.mubr.bf16.mxu1 %v507_v6  ;;  %v244_v10 = vld [vmem:[%s690_s2] sm:$0xff]  ;;  %v504_v13 = vld [vmem:[%s689_s1 + $0x8] sm:$0xff]  }
   0x6   :  { %272 = vperm.xlu1 %497, %v246_v9   ;;  %262 = vperm.xlu0 %496, %v244_v10  }
   0x7   :  { %447 = vmatpush3.bf16.msra.mxu0 %v499_v1  ;;  %485 = vmatpush3.bf16.msra.mxu1 %v499_v1 }
   0x8   :  { %448 = vmatprep.subr.bf16.mxu0 %v500_v3  ;;  %478 = vmatprep.subr.bf16.mxu1 %v500_v3 }
   0xa   :  { %277 = vperm.xlu1 %497, %v247_v11   ;;  %267 = vperm.xlu0 %496, %v245_v12  }
   0xb   :  { %449 = vmatpush3.bf16.msra.mxu0 %v500_v3  ;;  %486 = vmatpush3.bf16.msra.mxu1 %v500_v3 }
   0xc   :  { %450 = vmatprep.subr.bf16.mxu0 %v501_v4  ;;  %479 = vmatprep.subr.bf16.mxu1 %v501_v4 }
   0xf   :  { %451 = vmatpush3.bf16.msra.mxu0 %v501_v4  ;;  %487 = vmatpush3.bf16.msra.mxu1 %v501_v4 }
  0x10   :  { %452 = vmatprep.subr.bf16.mxu0 %v502_v7  ;;  %480 = vmatprep.subr.bf16.mxu1 %v502_v7 }
  0x13   :  { %453 = vmatpush3.bf16.msra.mxu0 %v502_v7  ;;  %488 = vmatpush3.bf16.msra.mxu1 %v502_v7 }
  0x14   :  { %454 = vmatprep.subr.bf16.mxu0 %v503_v8  ;;  %481 = vmatprep.subr.bf16.mxu1 %v503_v8 }
  0x15   :  { %9 = vsyncpa [#allocation3], 0  ;;  %v249_v14 = vld [vmem:[%s690_s2 + $0x28] sm:$0xff]  ;;  %v248_v15 = vld [vmem:[%s690_s2 + $0x20] sm:$0xff] }
  0x16   :  { %v505_v16 = vld [vmem:[%s689_s1] sm:$0xff]   ;;  %287 = vperm.xlu1 %497, %v249_v14   ;;  %282 = vperm.xlu0 %496, %v248_v15   ;;  %v251_v17 = vld [vmem:[%s690_s2 + $0x38] sm:$0xff]  ;;  %v250_v18 = vld [vmem:[%s690_s2 + $0x30] sm:$0xff] }
  0x17   :  { %455 = vmatpush3.bf16.msra.mxu0 %v503_v8  ;;  %489 = vmatpush3.bf16.msra.mxu1 %v503_v8  ;;  %v508_v19 = vld [vmem:[%s688_s0 + $0x8] sm:$0xff]   ;;  %v252_v22 = vld [vmem:[%s690_s2 + $0x40] sm:$0xff]  ;;  %v510_v23 = vld [vmem:[%s688_s0 + $0x10] sm:$0xff]  }
  0x18   :  { %456 = vmatprep.subr.bf16.mxu0 %v504_v13  ;;  %482 = vmatprep.subr.bf16.mxu1 %v504_v13  ;;  %v509_v20 = vld [vmem:[%s688_s0 + $0x28] sm:$0xff]   ;;  %v511_v24 = vld [vmem:[%s688_s0 + $0x30] sm:$0xff]   ;;  %v255_v25 = vld [vmem:[%s690_s2 + $0x58] sm:$0xff] }
  0x19   :  { %v253_v21 = vld [vmem:[%s690_s2 + $0x48] sm:$0xff]  ;;  %v254_v26 = vld [vmem:[%s690_s2 + $0x50] sm:$0xff]  ;;  %v512_v27 = vld [vmem:[%s688_s0 + $0x18] sm:$0xff]  }
  0x1a   :  { %297 = vperm.xlu1 %497, %v251_v17   ;;  %292 = vperm.xlu0 %496, %v250_v18   ;;  %v513_v28 = vld [vmem:[%s688_s0 + $0x38] sm:$0xff]   ;;  %v257_v29 = vld [vmem:[%s690_s2 + $0x68] sm:$0xff]  ;;  %v256_v30 = vld [vmem:[%s690_s2 + $0x60] sm:$0xff] }
  0x1b   :  { %457 = vmatpush3.bf16.msra.mxu0 %v504_v13  ;;  %490 = vmatpush3.bf16.msra.mxu1 %v504_v13  ;;  %v259_v31 = vld [vmem:[%s690_s2 + $0x78] sm:$0xff]  ;;  %v258_v32 = vld [vmem:[%s690_s2 + $0x70] sm:$0xff]  ;;  %v666_v46 = vld [vmem:[%s691_s3] ss:$0 sm:$0xff]  ;;  %s537_s2 = smov [#allocation2]  }
  0x1c   :  { %458 = vmatprep.subr.bf16.mxu0 %v505_v16  ;;  %483 = vmatprep.subr.bf16.mxu1 %v505_v16  ;;  %s400_s3 = sshll.u32 %s537_s2, 4  ;;  %s401_s3 = int_to_ptr.vmem [resolvable:$true] %s400_s3 }
  0x1d   :  { %s514_s1 = scalar_lea.vmem %s401_s3, 2048  ;;  %p519_p1 = scmp.lt.s32.totalorder %s401_s3, %s401_s3 }
  0x1e   :  { %307 = vperm.xlu1 %497, %v253_v21   ;;  %302 = vperm.xlu0 %496, %v252_v22   ;;  %p515_p0 = scmp.ne.s32.totalorder %s401_s3, %s514_s1  ;;  %p520_p2 = scmp.lt.s32.totalorder %s514_s1, %s514_s1 }
  0x1f   :  { %459 = vmatpush3.bf16.msra.mxu0 %v505_v16  ;;  %491 = vmatpush3.bf16.msra.mxu1 %v505_v16 }
  0x20   :  { %p521_p3 = por %p520_p2, %p519_p1 }
  0x22   :  { %461 = vmatmul.mubr.bf16.vlgmr.msra.gmra.mxu0 %v508_v19  ;;  %469 = vmatmul.mubr.bf16.vlgmr.msra.gmra.mxu1 %v509_v20  ;;  %p522_p4 = pnand %p521_p3, %p515_p0 }
  0x23   :  { %464 = vmatprep.mubr.bf16.mxu0 %v510_v23  ;;  %472 = vmatprep.mubr.bf16.mxu1 %v511_v24 }
  0x24   :  { %317 = vperm.xlu1 %497, %v255_v25   ;;  %312 = vperm.xlu0 %496, %v254_v26  }
  0x28   :  { %327 = vperm.xlu1 %497, %v257_v29   ;;  %322 = vperm.xlu0 %496, %v256_v30  }
  0x2a   :  { %465 = vmatmul.mubr.bf16.gmra.mxu0 %v512_v27  ;;  %473 = vmatmul.mubr.bf16.gmra.mxu1 %v513_v28 }
  0x2c   :  { %337 = vperm.xlu1 %497, %v259_v31   ;;  %332 = vperm.xlu0 %496, %v258_v32  }
  0x81   :  { %v263_v33 = vpop.permute.xlu0 %262  ;;  %v273_v34 = vpop.permute.xlu1 %272 }
  0x85   :  { %v268_v35 = vpop.permute.xlu0 %267  ;;  %v278_v36 = vpop.permute.xlu1 %277 }
  0x91   :  { %v283_v37 = vpop.permute.xlu0 %282  ;;  %v661_v38 = vpop.permute.xlu1 %287 }
  0x95   :  { %v293_v39 = vpop.permute.xlu0 %292  ;;  %v298_v40 = vpop.permute.xlu1 %297 }
  0x99   :  { %v303_v41 = vpop.permute.xlu0 %302  ;;  %v308_v42 = vpop.permute.xlu1 %307 }
  0x9f   :  { %v313_v43 = vpop.permute.xlu0 %312  ;;  %v318_v44 = vpop.permute.xlu1 %317 }
  0xa3   :  { %v323_v48 = vpop.permute.xlu0 %322  ;;  %v328_v59 = vpop.permute.xlu1 %327 }
  0xa7   :  { %v333_v2 = vpop.permute.xlu0 %332  ;;  %v338_v15 = vpop.permute.xlu1 %337 }
  0xe2   :  { %v462_v45 = vpop.f32.mrf.mxu0  ;;  %v470_v47 = vpop.f32.mrf.mxu1 }
  0xe3   :  { %v342_v49 = vmul.f32 %v462_v45, %v273_v34  ;;  %v350_v50 = vmul.f32 %v470_v47, %v313_v43 }
  0xe4   :  { %v181_v51 = vpop.f32.mrf.mxu0  ;;  %v213_v52 = vpop.f32.mrf.mxu1 }
  0xe5   :  { %v365_v53 = vadd.f32 %v666_v46, %v342_v49  ;;  %v373_v54 = vadd.f32 %v666_v46, %v350_v50  ;;  %v340_v55 = vmul.f32 %v263_v33, %v181_v51  ;;  %v348_v56 = vmul.f32 %v303_v41, %v213_v52 }
  0xe6   :  { %v463_v57 = vpop.f32.mrf.mxu0  ;;  %v471_v58 = vpop.f32.mrf.mxu1 }
  0xe7   :  { %381 = vst [vmem:[#allocation2 + $0x10] sm:$0xff] %v365_v53  ;;  %389 = vst [vmem:[#allocation2 + $0x50] sm:$0xff] %v373_v54  ;;  %v363_v60 = vadd.f32 %v666_v46, %v340_v55  ;;  %v371_v61 = vadd.f32 %v666_v46, %v348_v56  ;;  %v343_v62 = vmul.f32 %v463_v57, %v278_v36 }
  0xe8   :  { %v351_v63 = vmul.f32 %v471_v58, %v318_v44  ;;  %v184_v0 = vpop.f32.mrf.mxu0  ;;  %v216_v1 = vpop.f32.mrf.mxu1 }
  0xe9   :  { %379 = vst [vmem:[#allocation2] sm:$0xff] %v363_v60  ;;  %387 = vst [vmem:[#allocation2 + $0x40] sm:$0xff] %v371_v61  ;;  %v366_v3 = vadd.f32 %v666_v46, %v343_v62  ;;  %v341_v5 = vmul.f32 %v268_v35, %v184_v0  ;;  %v349_v6 = vmul.f32 %v308_v42, %v216_v1 }
  0xea   :  { %v374_v4 = vadd.f32 %v666_v46, %v351_v63  ;;  %v466_v7 = vpop.f32.mrf.mxu0  ;;  %v474_v8 = vpop.f32.mrf.mxu1 }
  0xeb   :  { %382 = vst [vmem:[#allocation2 + $0x18] sm:$0xff] %v366_v3  ;;  %v364_v9 = vadd.f32 %v666_v46, %v341_v5  ;;  %v372_v10 = vadd.f32 %v666_v46, %v349_v6  ;;  %v346_v11 = vmul.f32 %v466_v7, %v293_v39  ;;  %v354_v12 = vmul.f32 %v474_v8, %v333_v2 }
  0xec   :  { %390 = vst [vmem:[#allocation2 + $0x58] sm:$0xff] %v374_v4  ;;  %v197_v13 = vpop.f32.mrf.mxu0  ;;  %v229_v14 = vpop.f32.mrf.mxu1 }
  0xed   :  { %380 = vst [vmem:[#allocation2 + $0x8] sm:$0xff] %v364_v9  ;;  %388 = vst [vmem:[#allocation2 + $0x48] sm:$0xff] %v372_v10  ;;  %v369_v16 = vadd.f32 %v666_v46, %v346_v11  ;;  %v377_v17 = vadd.f32 %v666_v46, %v354_v12  ;;  %v344_v18 = vmul.f32 %v283_v37, %v197_v13 }
  0xee   :  { %v352_v19 = vmul.f32 %v323_v48, %v229_v14  ;;  %v467_v20 = vpop.f32.mrf.mxu0  ;;  %v475_v21 = vpop.f32.mrf.mxu1 }
  0xef   :  { %385 = vst [vmem:[#allocation2 + $0x30] sm:$0xff] %v369_v16  ;;  %393 = vst [vmem:[#allocation2 + $0x70] sm:$0xff] %v377_v17  ;;  %v367_v22 = vadd.f32 %v666_v46, %v344_v18  ;;  %v347_v24 = vmul.f32 %v467_v20, %v298_v40  ;;  %v355_v25 = vmul.f32 %v475_v21, %v338_v15 }
  0xf0   :  { %v375_v23 = vadd.f32 %v666_v46, %v352_v19  ;;  %v200_v26 = vpop.f32.mrf.mxu0  ;;  %v232_v27 = vpop.f32.mrf.mxu1 }
  0xf1   :  { %383 = vst [vmem:[#allocation2 + $0x20] sm:$0xff] %v367_v22  ;;  %v370_v28 = vadd.f32 %v666_v46, %v347_v24  ;;  %v378_v29 = vadd.f32 %v666_v46, %v355_v25  ;;  %v345_v30 = vmul.f32 %v661_v38, %v200_v26  ;;  %v353_v31 = vmul.f32 %v328_v59, %v232_v27 }
  0xf2   :  { %391 = vst [vmem:[#allocation2 + $0x60] sm:$0xff] %v375_v23 }
  0xf3   :  { %386 = vst [vmem:[#allocation2 + $0x38] sm:$0xff] %v370_v28  ;;  %394 = vst [vmem:[#allocation2 + $0x78] sm:$0xff] %v378_v29  ;;  %v368_v32 = vadd.f32 %v666_v46, %v345_v30  ;;  %v376_v33 = vadd.f32 %v666_v46, %v353_v31 }
  0xf5   :  { %384 = vst [vmem:[#allocation2 + $0x28] sm:$0xff] %v368_v32  ;;  %392 = vst [vmem:[#allocation2 + $0x68] sm:$0xff] %v376_v33 }
  0xf6   :  { %525 = shalt.err (!%p522_p4)
}
  0xf7   :  { %s538_s27 = smov 128   ;;  %s539_s28 = smov 8  }
  0xf8   :  { %406 = dma.vmem_to_hbm [thread:$0]  %s401_s3, 2048, %s692_s4, [#allocation3], %s538_s27, %s538_s27, %s539_s28  }
  0xf9   :  { %534 = dma.done.wait [#allocation3], 2048  }
  0xfa   :  { %535 = vsyncadd [#allocation3], 4294965248 }
  0xfb   :  { %410 = vsyncpa [#allocation3], 1 }

// kernel: gcn_forward.4
= control target key start
LH: loop header
LB: loop body
LE: loop exit
PB: predicated region body
PF: predicated region fallthrough
CT: control target
= control target key end

     0   :  { %v614_v1 = vmov 0   ;;  %s755_s1 = inlined_call_operand.vmem [shape: bf16[128,128], index: 1, kind: input, shape index: {}]   ;;  %s756_s0 = inlined_call_operand.vmem [shape: bf16[128,128], index: 0, kind: input, shape index: {}]   ;;  %s757_s2 = inlined_call_operand.vmem [shape: f32[128,1], index: 2, kind: input, shape index: {}]   ;;  %s758_s3 = inlined_call_operand.vmem [shape: bf16[128,128], index: 3, kind: output, shape index: {}]  }
   0x1   :  { %v598_v0 = vld [vmem:[%s755_s1 + $0x38] sm:$0xff]   ;;  %597 = vset.pattern.permute.xlu1 %v614_v1  ;;  %596 = vset.pattern.permute.xlu0 %v614_v1  ;;  %v599_v2 = vld [vmem:[%s755_s1 + $0x30] sm:$0xff]   ;;  %v600_v3 = vld [vmem:[%s755_s1 + $0x28] sm:$0xff]  }
   0x2   :  { %547 = vmatprep.subr.bf16.mxu0 %v598_v0  ;;  %579 = vmatprep.subr.bf16.mxu1 %v598_v0  ;;  %v601_v4 = vld [vmem:[%s755_s1 + $0x20] sm:$0xff]   ;;  %v602_v7 = vld [vmem:[%s755_s1 + $0x18] sm:$0xff]   ;;  %v603_v8 = vld [vmem:[%s755_s1 + $0x10] sm:$0xff]  }
   0x3   :  { %548 = vmatpush3.bf16.msra.mxu0 %v598_v0  ;;  %587 = vmatpush3.bf16.msra.mxu1 %v598_v0  ;;  %v606_v5 = vld [vmem:[%s756_s0] sm:$0xff]   ;;  %v242_v9 = vld [vmem:[%s757_s2 + $0x10] sm:$0xff]  ;;  %v243_v11 = vld [vmem:[%s757_s2 + $0x18] sm:$0xff] }
   0x4   :  { %549 = vmatprep.subr.bf16.mxu0 %v599_v2  ;;  %580 = vmatprep.subr.bf16.mxu1 %v599_v2  ;;  %v607_v6 = vld [vmem:[%s756_s0 + $0x20] sm:$0xff]   ;;  %v241_v12 = vld [vmem:[%s757_s2 + $0x8] sm:$0xff]  ;;  %v247_v17 = vld [vmem:[%s757_s2 + $0x38] sm:$0xff] }
   0x5   :  { %563 = vmatprep.mubr.bf16.mxu0 %v606_v5  ;;  %571 = vmatprep.mubr.bf16.mxu1 %v607_v6  ;;  %v240_v10 = vld [vmem:[%s757_s2] sm:$0xff]  ;;  %v604_v13 = vld [vmem:[%s755_s1 + $0x8] sm:$0xff]   ;;  %v246_v18 = vld [vmem:[%s757_s2 + $0x30] sm:$0xff] }
   0x6   :  { %268 = vperm.xlu1 %597, %v242_v9   ;;  %258 = vperm.xlu0 %596, %v240_v10   ;;  %v245_v14 = vld [vmem:[%s757_s2 + $0x28] sm:$0xff]  ;;  %v244_v15 = vld [vmem:[%s757_s2 + $0x20] sm:$0xff]  ;;  %v610_v23 = vld [vmem:[%s756_s0 + $0x10] sm:$0xff]  }
   0x7   :  { %550 = vmatpush3.bf16.msra.mxu0 %v599_v2  ;;  %588 = vmatpush3.bf16.msra.mxu1 %v599_v2  ;;  %v605_v16 = vld [vmem:[%s755_s1] sm:$0xff]   ;;  %v608_v19 = vld [vmem:[%s756_s0 + $0x8] sm:$0xff]   ;;  %v611_v24 = vld [vmem:[%s756_s0 + $0x30] sm:$0xff]  }
   0x8   :  { %551 = vmatprep.subr.bf16.mxu0 %v600_v3  ;;  %581 = vmatprep.subr.bf16.mxu1 %v600_v3  ;;  %v609_v20 = vld [vmem:[%s756_s0 + $0x28] sm:$0xff]   ;;  %v248_v22 = vld [vmem:[%s757_s2 + $0x40] sm:$0xff]  ;;  %v251_v25 = vld [vmem:[%s757_s2 + $0x58] sm:$0xff] }
   0x9   :  { %v249_v21 = vld [vmem:[%s757_s2 + $0x48] sm:$0xff]  ;;  %v250_v26 = vld [vmem:[%s757_s2 + $0x50] sm:$0xff]  ;;  %v612_v27 = vld [vmem:[%s756_s0 + $0x18] sm:$0xff]  }
   0xa   :  { %273 = vperm.xlu1 %597, %v243_v11   ;;  %263 = vperm.xlu0 %596, %v241_v12   ;;  %v613_v28 = vld [vmem:[%s756_s0 + $0x38] sm:$0xff]   ;;  %v253_v29 = vld [vmem:[%s757_s2 + $0x68] sm:$0xff]  ;;  %v252_v30 = vld [vmem:[%s757_s2 + $0x60] sm:$0xff] }
   0xb   :  { %552 = vmatpush3.bf16.msra.mxu0 %v600_v3  ;;  %589 = vmatpush3.bf16.msra.mxu1 %v600_v3  ;;  %v255_v31 = vld [vmem:[%s757_s2 + $0x78] sm:$0xff]  ;;  %v254_v32 = vld [vmem:[%s757_s2 + $0x70] sm:$0xff] }
   0xc   :  { %553 = vmatprep.subr.bf16.mxu0 %v601_v4  ;;  %582 = vmatprep.subr.bf16.mxu1 %v601_v4 }
   0xe   :  { %283 = vperm.xlu1 %597, %v245_v14   ;;  %278 = vperm.xlu0 %596, %v244_v15  }
   0xf   :  { %554 = vmatpush3.bf16.msra.mxu0 %v601_v4  ;;  %590 = vmatpush3.bf16.msra.mxu1 %v601_v4 }
  0x10   :  { %555 = vmatprep.subr.bf16.mxu0 %v602_v7  ;;  %583 = vmatprep.subr.bf16.mxu1 %v602_v7 }
  0x12   :  { %293 = vperm.xlu1 %597, %v247_v17   ;;  %288 = vperm.xlu0 %596, %v246_v18  }
  0x13   :  { %556 = vmatpush3.bf16.msra.mxu0 %v602_v7  ;;  %591 = vmatpush3.bf16.msra.mxu1 %v602_v7 }
  0x14   :  { %557 = vmatprep.subr.bf16.mxu0 %v603_v8  ;;  %584 = vmatprep.subr.bf16.mxu1 %v603_v8 }
  0x16   :  { %303 = vperm.xlu1 %597, %v249_v21   ;;  %298 = vperm.xlu0 %596, %v248_v22  }
  0x17   :  { %558 = vmatpush3.bf16.msra.mxu0 %v603_v8  ;;  %592 = vmatpush3.bf16.msra.mxu1 %v603_v8 }
  0x18   :  { %559 = vmatprep.subr.bf16.mxu0 %v604_v13  ;;  %585 = vmatprep.subr.bf16.mxu1 %v604_v13 }
  0x1a   :  { %313 = vperm.xlu1 %597, %v251_v25   ;;  %308 = vperm.xlu0 %596, %v250_v26  }
  0x1b   :  { %560 = vmatpush3.bf16.msra.mxu0 %v604_v13  ;;  %593 = vmatpush3.bf16.msra.mxu1 %v604_v13 }
  0x1c   :  { %561 = vmatprep.subr.bf16.mxu0 %v605_v16  ;;  %586 = vmatprep.subr.bf16.mxu1 %v605_v16 }
  0x1e   :  { %323 = vperm.xlu1 %597, %v253_v29   ;;  %318 = vperm.xlu0 %596, %v252_v30  }
  0x1f   :  { %562 = vmatpush3.bf16.msra.mxu0 %v605_v16  ;;  %594 = vmatpush3.bf16.msra.mxu1 %v605_v16 }
  0x22   :  { %564 = vmatmul.mubr.bf16.vlgmr.msra.gmra.mxu0 %v608_v19  ;;  %572 = vmatmul.mubr.bf16.vlgmr.msra.gmra.mxu1 %v609_v20 }
  0x23   :  { %567 = vmatprep.mubr.bf16.mxu0 %v610_v23  ;;  %575 = vmatprep.mubr.bf16.mxu1 %v611_v24 }
  0x24   :  { %333 = vperm.xlu1 %597, %v255_v31   ;;  %328 = vperm.xlu0 %596, %v254_v32  }
  0x2a   :  { %568 = vmatmul.mubr.bf16.gmra.mxu0 %v612_v27  ;;  %576 = vmatmul.mubr.bf16.gmra.mxu1 %v613_v28 }
  0x81   :  { %v269_v33 = vpop.permute.xlu1 %268  ;;  %v259_v34 = vpop.permute.xlu0 %258 }
  0x85   :  { %v274_v35 = vpop.permute.xlu1 %273  ;;  %v264_v36 = vpop.permute.xlu0 %263 }
  0x89   :  { %v284_v37 = vpop.permute.xlu1 %283  ;;  %v279_v38 = vpop.permute.xlu0 %278 }
  0x8d   :  { %v294_v39 = vpop.permute.xlu1 %293  ;;  %v289_v40 = vpop.permute.xlu0 %288 }
  0x91   :  { %v304_v41 = vpop.permute.xlu1 %303  ;;  %v299_v42 = vpop.permute.xlu0 %298 }
  0x95   :  { %v314_v43 = vpop.permute.xlu1 %313  ;;  %v309_v44 = vpop.permute.xlu0 %308 }
  0x99   :  { %v324_v51 = vpop.permute.xlu1 %323  ;;  %v319_v52 = vpop.permute.xlu0 %318 }
  0x9f   :  { %v334_v7 = vpop.permute.xlu1 %333  ;;  %v329_v8 = vpop.permute.xlu0 %328 }
  0xe2   :  { %v565_v45 = vpop.f32.mrf.mxu0  ;;  %v573_v46 = vpop.f32.mrf.mxu1 }
  0xe3   :  { %v338_v53 = vmul.f32 %v565_v45, %v269_v33  ;;  %v346_v54 = vmul.f32 %v573_v46, %v309_v44 }
  0xe4   :  { %v177_v47 = vpop.f32.mrf.mxu0  ;;  %v209_v48 = vpop.f32.mrf.mxu1 }
  0xe5   :  { %v336_v57 = vmul.f32 %v259_v34, %v177_v47  ;;  %v344_v58 = vmul.f32 %v299_v42, %v209_v48 }
  0xe6   :  { %v566_v49 = vpop.f32.mrf.mxu0  ;;  %v574_v50 = vpop.f32.mrf.mxu1 }
  0xe7   :  { %v339_v55 = vmul.f32 %v566_v49, %v274_v35  ;;  %v347_v56 = vmul.f32 %v574_v50, %v314_v43 }
  0xe8   :  { %v180_v59 = vpop.f32.mrf.mxu0  ;;  %v212_v60 = vpop.f32.mrf.mxu1 }
  0xe9   :  { %v492_v61 = vpack.c.bf16 %v339_v55, %v338_v53  ;;  %v512_v62 = vpack.c.bf16 %v347_v56, %v346_v54  ;;  %v337_v63 = vmul.f32 %v264_v36, %v180_v59  ;;  %v345_v0 = vmul.f32 %v304_v41, %v212_v60 }
  0xea   :  { %v569_v1 = vpop.f32.mrf.mxu0  ;;  %v577_v2 = vpop.f32.mrf.mxu1 }
  0xeb   :  { %524 = vst [vmem:[%s758_s3 + $0x8] sm:$0xff] %v492_v61   ;;  %528 = vst [vmem:[%s758_s3 + $0x28] sm:$0xff] %v512_v62   ;;  %v487_v3 = vpack.c.bf16 %v337_v63, %v336_v57  ;;  %v507_v4 = vpack.c.bf16 %v345_v0, %v344_v58  ;;  %v342_v11 = vmul.f32 %v569_v1, %v289_v40 }
  0xec   :  { %v193_v5 = vpop.f32.mrf.mxu0  ;;  %v225_v6 = vpop.f32.mrf.mxu1  ;;  %v350_v12 = vmul.f32 %v577_v2, %v329_v8 }
  0xed   :  { %488 = vst [vmem:[%s758_s3] sm:$0xff] %v487_v3   ;;  %527 = vst [vmem:[%s758_s3 + $0x20] sm:$0xff] %v507_v4   ;;  %v340_v15 = vmul.f32 %v279_v38, %v193_v5  ;;  %v348_v16 = vmul.f32 %v319_v52, %v225_v6 }
  0xee   :  { %v570_v9 = vpop.f32.mrf.mxu0  ;;  %v578_v10 = vpop.f32.mrf.mxu1 }
  0xef   :  { %v343_v13 = vmul.f32 %v570_v9, %v294_v39  ;;  %v351_v14 = vmul.f32 %v578_v10, %v334_v7 }
  0xf0   :  { %v196_v17 = vpop.f32.mrf.mxu0  ;;  %v228_v18 = vpop.f32.mrf.mxu1 }
  0xf1   :  { %v502_v19 = vpack.c.bf16 %v343_v13, %v342_v11  ;;  %v522_v20 = vpack.c.bf16 %v351_v14, %v350_v12  ;;  %v341_v21 = vmul.f32 %v284_v37, %v196_v17  ;;  %v349_v22 = vmul.f32 %v324_v51, %v228_v18 }
  0xf3   :  { %526 = vst [vmem:[%s758_s3 + $0x18] sm:$0xff] %v502_v19   ;;  %530 = vst [vmem:[%s758_s3 + $0x38] sm:$0xff] %v522_v20   ;;  %v497_v23 = vpack.c.bf16 %v341_v21, %v340_v15  ;;  %v517_v24 = vpack.c.bf16 %v349_v22, %v348_v16 }
  0xf5   :  { %525 = vst [vmem:[%s758_s3 + $0x10] sm:$0xff] %v497_v23   ;;  %529 = vst [vmem:[%s758_s3 + $0x30] sm:$0xff] %v517_v24  }

</bundles_post_ra>
